<compile_context>
chip_gen: v6e
topology: v6e:2x2x1
jax: 0.10.0
libtpu: 0.0.40
codegen_flags: <defaults>
</compile_context>

<pallas_src>
import functools

import jax
import jax.numpy as jnp
from jax.experimental import pallas as pl
from jax.experimental.pallas import tpu as pltpu


def _reformer_kernel(x_ref, xs_ref, wqkv_ref, bqkv_ref, wu_ref,
                     w1_ref, b1_ref, w2_ref, vec_ref, out_ref,
                     *, dhalf, hdqk, nc, ch, dqk, penalty, eps):
    x = x_ref[...]                       # (n, dmodel)  original row order
    xs = xs_ref[...]                     # (n, dhalf)   x2 rows in LSH-sorted order
    x1 = x[:, :dhalf]
    x2 = x[:, dhalf:]

    # Fused QK / V projection of the sorted rows: one MXU push instead of two.
    qkv = jnp.dot(xs, wqkv_ref[...], preferred_element_type=jnp.float32) + bqkv_ref[...]
    qk_s = qkv[:, :hdqk]                 # (n, heads*dqk)
    v_s = qkv[:, hdqk:]                  # (n, heads*dv)

    # 1/sqrt(dqk) combined with the in-place-penalty diagonal divide.
    r = jax.lax.broadcasted_iota(jnp.int32, (ch, ch), 0)
    c = jax.lax.broadcasted_iota(jnp.int32, (ch, ch), 1)
    coef = jnp.where(r == c, 1.0 / penalty, 1.0) * (1.0 / (dqk ** 0.5))

    # Chunked attention (no softmax, per the reference). Static unrolled loop
    # over the nc chunks of this batch element; dot_general contracts the last
    # dims so K is never explicitly transposed.
    attn_chunks = []
    for cidx in range(nc):
        lo = cidx * ch
        qc = qk_s[lo:lo + ch, :]
        vc = v_s[lo:lo + ch, :]
        sc = jax.lax.dot_general(qc, qc, (((1,), (1,)), ((), ())),
                                 preferred_element_type=jnp.float32)
        sc = sc * coef
        attn_chunks.append(jnp.dot(sc, vc, preferred_element_type=jnp.float32))
    attn = attn_chunks[0] if nc == 1 else jnp.concatenate(attn_chunks, axis=0)

    vec = vec_ref[...]                   # (6, dhalf) packed small params
    bu, b2 = vec[0:1, :], vec[1:2, :]
    g1, beta1 = vec[2:3, :], vec[3:4, :]
    g2, beta2 = vec[4:5, :], vec[5:6, :]

    unified = jnp.dot(attn, wu_ref[...], preferred_element_type=jnp.float32) + bu

    # residual + LayerNorm 1 (biased variance, like nn.LayerNorm)
    h1 = x1 + unified
    mu1 = jnp.mean(h1, axis=-1, keepdims=True)
    var1 = jnp.mean((h1 - mu1) ** 2, axis=-1, keepdims=True)
    y1 = (h1 - mu1) * jax.lax.rsqrt(var1 + eps) * g1 + beta1

    # feed-forward: Linear -> ReLU -> Linear
    f = jnp.dot(y1, w1_ref[...], preferred_element_type=jnp.float32) + b1_ref[...]
    f = jnp.maximum(f, 0.0)
    f = jnp.dot(f, w2_ref[...], preferred_element_type=jnp.float32) + b2

    # residual against x2 + LayerNorm 2
    h2 = x2 + f
    mu2 = jnp.mean(h2, axis=-1, keepdims=True)
    var2 = jnp.mean((h2 - mu2) ** 2, axis=-1, keepdims=True)
    y2 = (h2 - mu2) * jax.lax.rsqrt(var2 + eps) * g2 + beta2

    out_ref[...] = jnp.concatenate([y1, y2], axis=-1).astype(out_ref.dtype)


def reformer_encoder(x, params, *, dqk, num_buckets, penalty=100000.0, eps=1e-5):
    """x: (d, n, dmodel). params hold (in,out)-transposed weights / (1,out) biases."""
    d, n, dmodel = x.shape
    assert dmodel % 2 == 0 and num_buckets % 2 == 0 and n % num_buckets == 0
    dhalf = dmodel // 2
    ch = 2 * (n // num_buckets)
    nc = num_buckets // 2
    hdqk = params["wqk"].shape[1]

    x2 = x[:, :, dhalf:]

    # ---- LSH hashing, bucket argsort and row gather (plain JAX).
    # TODO(synk): argsort/gather of LSH buckets kept in XLA — no Pallas TPU sort.
    qk = x2 @ params["wqk"] + params["bqk"]
    proj = qk @ params["hash"]
    hashes = jnp.argmax(jnp.concatenate([proj, -proj], axis=-1), axis=-1)
    sorted_idx = jnp.argsort(hashes, axis=-1)
    x2_sorted = jnp.take_along_axis(x2, sorted_idx[:, :, None], axis=1)

    # ---- pack the 16 tiny weight/bias arrays into 7 kernel inputs.
    w_qkv = jnp.concatenate([params["wqk"], params["wv"]], axis=1)
    b_qkv = jnp.concatenate([params["bqk"], params["bv"]], axis=1)
    vec6 = jnp.concatenate([params["bu"], params["b2"], params["g1"],
                            params["beta1"], params["g2"], params["beta2"]], axis=0)
    weights = [w_qkv, b_qkv, params["wu"], params["w1"], params["b1"],
               params["w2"], vec6]

    kernel = functools.partial(
        _reformer_kernel, dhalf=dhalf, hdqk=hdqk, nc=nc, ch=ch,
        dqk=dqk, penalty=penalty, eps=eps)

    in_specs = [
        pl.BlockSpec((None, n, dmodel), lambda b: (b, 0, 0)),   # x (batch dim squeezed)
        pl.BlockSpec((None, n, dhalf), lambda b: (b, 0, 0)),    # x2 sorted
    ]
    in_specs += [pl.BlockSpec(w.shape, lambda b: (0, 0)) for w in weights]

    return pl.pallas_call(
        kernel,
        out_shape=jax.ShapeDtypeStruct((d, n, dmodel), x.dtype),
        grid_spec=pltpu.PrefetchScalarGridSpec(
            num_scalar_prefetch=0,
            grid=(d,),
            in_specs=in_specs,
            out_specs=pl.BlockSpec((None, n, dmodel), lambda b: (b, 0, 0)),
        ),
        compiler_params=pltpu.CompilerParams(
            dimension_semantics=("parallel",)),
    )(x, x2_sorted, *weights)


def _reference(x, p, *, dqk, num_buckets, penalty=100000.0, eps=1e-5):
    """Pure-JAX mirror of the PyTorch forward, for the correctness check."""
    d, n, dmodel = x.shape
    dhalf = dmodel // 2
    ch = 2 * (n // num_buckets)
    nc = num_buckets // 2
    x1, x2 = x[..., :dhalf], x[..., dhalf:]

    qk = x2 @ p["wqk"] + p["bqk"]
    proj = qk @ p["hash"]
    hashes = jnp.argmax(jnp.concatenate([proj, -proj], axis=-1), axis=-1)
    idx = jnp.argsort(hashes, axis=-1)
    qk_s = jnp.take_along_axis(qk, idx[..., None], axis=1)
    v = x2 @ p["wv"] + p["bv"]
    v_s = jnp.take_along_axis(v, idx[..., None], axis=1)

    qk_c = qk_s.reshape(d * nc, ch, -1)
    v_c = v_s.reshape(d * nc, ch, -1)
    scores = jnp.einsum("bik,bjk->bij", qk_c, qk_c) / (dqk ** 0.5)
    diag = 1.0 + jnp.eye(ch, dtype=jnp.float32) * (penalty - 1.0)
    scores = scores / diag
    attn = jnp.einsum("bij,bjv->biv", scores, v_c).reshape(d, n, -1)
    unified = attn @ p["wu"] + p["bu"]

    def ln(h, g, b):
        mu = jnp.mean(h, axis=-1, keepdims=True)
        var = jnp.mean((h - mu) ** 2, axis=-1, keepdims=True)
        return (h - mu) * jax.lax.rsqrt(var + eps) * g + b

    y1 = ln(x1 + unified, p["g1"], p["beta1"])
    f = jnp.maximum(y1 @ p["w1"] + p["b1"], 0.0) @ p["w2"] + p["b2"]
    y2 = ln(x2 + f, p["g2"], p["beta2"])
    return jnp.concatenate([y1, y2], axis=-1)


def _init_params(key, dmodel, dqk, dv, heads, feedforward, num_buckets):
    dhalf = dmodel // 2
    ks = jax.random.split(key, 11)

    def lin(kw, kb, fan_in, fan_out):
        w = jax.random.normal(kw, (fan_in, fan_out), jnp.float32) * 0.05
        b = jax.random.normal(kb, (1, fan_out), jnp.float32) * 0.05
        return w, b

    wqk, bqk = lin(ks[0], ks[1], dhalf, heads * dqk)
    wv, bv = lin(ks[2], ks[3], dhalf, heads * dv)
    wu, bu = lin(ks[4], ks[5], heads * dv, dhalf)
    w1, b1 = lin(ks[6], ks[7], dhalf, feedforward)
    w2, b2 = lin(ks[8], ks[9], feedforward, dhalf)
    hash_m = jax.random.normal(ks[10], (heads * dqk, num_buckets // 2), jnp.float32)
    return dict(
        wqk=wqk, bqk=bqk, wv=wv, bv=bv, wu=wu, bu=bu,
        w1=w1, b1=b1, w2=w2, b2=b2, hash=hash_m,
        g1=jnp.ones((1, dhalf), jnp.float32),
        beta1=jnp.zeros((1, dhalf), jnp.float32),
        g2=jnp.ones((1, dhalf), jnp.float32),
        beta2=jnp.zeros((1, dhalf), jnp.float32),
    )


if __name__ == "__main__":
    # Small shapes consistent with the module's asserts:
    # dmodel even, num_buckets even, n % num_buckets == 0.
    dmodel, dqk, dv, heads, feedforward, num_buckets = 32, 8, 8, 4, 64, 4
    d, n = 2, 8  # batch, sequence -> ch = 4 rows/chunk, nc = 2 chunks/batch

    key = jax.random.PRNGKey(0)
    kx, kp = jax.random.split(key)
    x = jax.random.normal(kx, (d, n, dmodel), jnp.float32)
    params = _init_params(kp, dmodel, dqk, dv, heads, feedforward, num_buckets)

    y = reformer_encoder(x, params, dqk=dqk, num_buckets=num_buckets)
    y = jax.block_until_ready(y)

    y_ref = _reference(x, params, dqk=dqk, num_buckets=num_buckets)
    assert y.shape == (d, n, dmodel)
    assert jnp.allclose(y, y_ref, atol=2e-2, rtol=1e-3), "mismatch vs reference"

    print("KERNEL_OK")
</pallas_src>

<mosaic_0001>
module attributes {stable_mosaic.version = 11 : i64} {
  func.func @_reformer_kernel(%arg0: i32, %arg1: memref<1x8x32xf32, #tpu.memory_space<vmem>>, %arg2: memref<1x8x16xf32, #tpu.memory_space<vmem>>, %arg3: memref<16x64xf32, #tpu.memory_space<vmem>>, %arg4: memref<1x64xf32, #tpu.memory_space<vmem>>, %arg5: memref<32x16xf32, #tpu.memory_space<vmem>>, %arg6: memref<16x64xf32, #tpu.memory_space<vmem>>, %arg7: memref<1x64xf32, #tpu.memory_space<vmem>>, %arg8: memref<64x16xf32, #tpu.memory_space<vmem>>, %arg9: memref<6x16xf32, #tpu.memory_space<vmem>>, %arg10: memref<1x8x32xf32, #tpu.memory_space<vmem>>) attributes {dimension_semantics = [#tpu.dimension_semantics<parallel>], iteration_bounds = array<i64: 2>, scalar_prefetch = 0 : i64, scratch_operands = 0 : i64, tpu.core_type = #tpu.core_type<tc>, window_params = [{transform_indices = @transform_0, window_bounds = array<i64: 1, 8, 32>}, {transform_indices = @transform_1, window_bounds = array<i64: 1, 8, 16>}, {pipeline_mode = #tpu.pipeline_mode<synchronous>, transform_indices = @transform_2, window_bounds = array<i64: 16, 64>}, {pipeline_mode = #tpu.pipeline_mode<synchronous>, transform_indices = @transform_3, window_bounds = array<i64: 1, 64>}, {pipeline_mode = #tpu.pipeline_mode<synchronous>, transform_indices = @transform_4, window_bounds = array<i64: 32, 16>}, {pipeline_mode = #tpu.pipeline_mode<synchronous>, transform_indices = @transform_5, window_bounds = array<i64: 16, 64>}, {pipeline_mode = #tpu.pipeline_mode<synchronous>, transform_indices = @transform_6, window_bounds = array<i64: 1, 64>}, {pipeline_mode = #tpu.pipeline_mode<synchronous>, transform_indices = @transform_7, window_bounds = array<i64: 64, 16>}, {pipeline_mode = #tpu.pipeline_mode<synchronous>, transform_indices = @transform_8, window_bounds = array<i64: 6, 16>}, {transform_indices = @transform_9, window_bounds = array<i64: 1, 8, 32>}]} {
    %c0 = arith.constant 0 : index
    %c0_0 = arith.constant 0 : index
    %c0_1 = arith.constant 0 : index
    %0 = vector.load %arg1[%c0, %c0_0, %c0_1] : memref<1x8x32xf32, #tpu.memory_space<vmem>>, vector<1x8x32xf32>
    %1 = vector.shape_cast %0 : vector<1x8x32xf32> to vector<8x32xf32>
    %c0_2 = arith.constant 0 : index
    %c0_3 = arith.constant 0 : index
    %c0_4 = arith.constant 0 : index
    %2 = vector.load %arg2[%c0_2, %c0_3, %c0_4] : memref<1x8x16xf32, #tpu.memory_space<vmem>>, vector<1x8x16xf32>
    %3 = vector.shape_cast %2 : vector<1x8x16xf32> to vector<8x16xf32>
    %4 = vector.extract_strided_slice %1 {offsets = [0, 0], sizes = [8, 16], strides = [1, 1]} : vector<8x32xf32> to vector<8x16xf32>
    %5 = vector.extract_strided_slice %1 {offsets = [0, 16], sizes = [8, 16], strides = [1, 1]} : vector<8x32xf32> to vector<8x16xf32>
    %c0_5 = arith.constant 0 : index
    %c0_6 = arith.constant 0 : index
    %6 = vector.load %arg3[%c0_5, %c0_6] : memref<16x64xf32, #tpu.memory_space<vmem>>, vector<16x64xf32>
    %cst = arith.constant dense<0.000000e+00> : vector<8x64xf32>
    %7 = tpu.matmul %3, %6, %cst {dimension_numbers = #tpu.dot_dimension_numbers<[1], [0], [0], [1], [0, 0, 1, 1], [], []>} : vector<8x16xf32>, vector<16x64xf32>, vector<8x64xf32> -> vector<8x64xf32>
    %c0_7 = arith.constant 0 : index
    %c0_8 = arith.constant 0 : index
    %8 = vector.load %arg4[%c0_7, %c0_8] : memref<1x64xf32, #tpu.memory_space<vmem>>, vector<1x64xf32>
    %9 = vector.broadcast %8 : vector<1x64xf32> to vector<8x64xf32>
    %10 = arith.addf %7, %9 : vector<8x64xf32>
    %11 = vector.extract_strided_slice %10 {offsets = [0, 0], sizes = [8, 32], strides = [1, 1]} : vector<8x64xf32> to vector<8x32xf32>
    %12 = vector.extract_strided_slice %10 {offsets = [0, 32], sizes = [8, 32], strides = [1, 1]} : vector<8x64xf32> to vector<8x32xf32>
    %13 = tpu.iota {dimensions = array<i32: 0>} : vector<4x4xi32>
    %14 = tpu.iota {dimensions = array<i32: 1>} : vector<4x4xi32>
    %15 = arith.cmpi eq, %13, %14 : vector<4x4xi32>
    %cst_9 = arith.constant 9.99999974E-6 : f32
    %cst_10 = arith.constant 1.000000e+00 : f32
    %16 = vector.broadcast %cst_9 : f32 to vector<4x4xf32>
    %17 = vector.broadcast %cst_10 : f32 to vector<4x4xf32>
    %18 = arith.select %15, %16, %17 : vector<4x4xi1>, vector<4x4xf32>
    %cst_11 = arith.constant 0.353553385 : f32
    %19 = vector.broadcast %cst_11 : f32 to vector<4x4xf32>
    %20 = arith.mulf %18, %19 : vector<4x4xf32>
    %21 = vector.extract_strided_slice %11 {offsets = [0, 0], sizes = [4, 32], strides = [1, 1]} : vector<8x32xf32> to vector<4x32xf32>
    %22 = vector.extract_strided_slice %12 {offsets = [0, 0], sizes = [4, 32], strides = [1, 1]} : vector<8x32xf32> to vector<4x32xf32>
    %cst_12 = arith.constant dense<0.000000e+00> : vector<4x4xf32>
    %23 = tpu.matmul %21, %21, %cst_12 {dimension_numbers = #tpu.dot_dimension_numbers<[1], [1], [0], [0], [0, 0, 1, 0], [], []>} : vector<4x32xf32>, vector<4x32xf32>, vector<4x4xf32> -> vector<4x4xf32>
    %24 = arith.mulf %23, %20 : vector<4x4xf32>
    %cst_13 = arith.constant dense<0.000000e+00> : vector<4x32xf32>
    %25 = tpu.matmul %24, %22, %cst_13 {dimension_numbers = #tpu.dot_dimension_numbers<[1], [0], [0], [1], [0, 0, 1, 1], [], []>} : vector<4x4xf32>, vector<4x32xf32>, vector<4x32xf32> -> vector<4x32xf32>
    %26 = vector.extract_strided_slice %11 {offsets = [4, 0], sizes = [4, 32], strides = [1, 1]} : vector<8x32xf32> to vector<4x32xf32>
    %27 = vector.extract_strided_slice %12 {offsets = [4, 0], sizes = [4, 32], strides = [1, 1]} : vector<8x32xf32> to vector<4x32xf32>
    %cst_14 = arith.constant dense<0.000000e+00> : vector<4x4xf32>
    %28 = tpu.matmul %26, %26, %cst_14 {dimension_numbers = #tpu.dot_dimension_numbers<[1], [1], [0], [0], [0, 0, 1, 0], [], []>} : vector<4x32xf32>, vector<4x32xf32>, vector<4x4xf32> -> vector<4x4xf32>
    %29 = arith.mulf %28, %20 : vector<4x4xf32>
    %cst_15 = arith.constant dense<0.000000e+00> : vector<4x32xf32>
    %30 = tpu.matmul %29, %27, %cst_15 {dimension_numbers = #tpu.dot_dimension_numbers<[1], [0], [0], [1], [0, 0, 1, 1], [], []>} : vector<4x4xf32>, vector<4x32xf32>, vector<4x32xf32> -> vector<4x32xf32>
    %31 = tpu.concatenate %25, %30 in 0 : vector<4x32xf32>, vector<4x32xf32> -> vector<8x32xf32>
    %c0_16 = arith.constant 0 : index
    %c0_17 = arith.constant 0 : index
    %32 = vector.load %arg9[%c0_16, %c0_17] : memref<6x16xf32, #tpu.memory_space<vmem>>, vector<6x16xf32>
    %33 = vector.extract_strided_slice %32 {offsets = [0, 0], sizes = [1, 16], strides = [1, 1]} : vector<6x16xf32> to vector<1x16xf32>
    %34 = vector.extract_strided_slice %32 {offsets = [1, 0], sizes = [1, 16], strides = [1, 1]} : vector<6x16xf32> to vector<1x16xf32>
    %35 = vector.extract_strided_slice %32 {offsets = [2, 0], sizes = [1, 16], strides = [1, 1]} : vector<6x16xf32> to vector<1x16xf32>
    %36 = vector.extract_strided_slice %32 {offsets = [3, 0], sizes = [1, 16], strides = [1, 1]} : vector<6x16xf32> to vector<1x16xf32>
    %37 = vector.extract_strided_slice %32 {offsets = [4, 0], sizes = [1, 16], strides = [1, 1]} : vector<6x16xf32> to vector<1x16xf32>
    %38 = vector.extract_strided_slice %32 {offsets = [5, 0], sizes = [1, 16], strides = [1, 1]} : vector<6x16xf32> to vector<1x16xf32>
    %c0_18 = arith.constant 0 : index
    %c0_19 = arith.constant 0 : index
    %39 = vector.load %arg5[%c0_18, %c0_19] : memref<32x16xf32, #tpu.memory_space<vmem>>, vector<32x16xf32>
    %cst_20 = arith.constant dense<0.000000e+00> : vector<8x16xf32>
    %40 = tpu.matmul %31, %39, %cst_20 {dimension_numbers = #tpu.dot_dimension_numbers<[1], [0], [0], [1], [0, 0, 1, 1], [], []>} : vector<8x32xf32>, vector<32x16xf32>, vector<8x16xf32> -> vector<8x16xf32>
    %41 = vector.broadcast %33 : vector<1x16xf32> to vector<8x16xf32>
    %42 = arith.addf %40, %41 : vector<8x16xf32>
    %43 = arith.addf %4, %42 : vector<8x16xf32>
    %cst_21 = arith.constant dense<0.000000e+00> : vector<8xf32>
    %44 = vector.multi_reduction <add>, %43, %cst_21 [1] : vector<8x16xf32> to vector<8xf32>
    %45 = vector.shape_cast %44 : vector<8xf32> to vector<8x1xf32>
    %cst_22 = arith.constant 1.600000e+01 : f32
    %46 = vector.broadcast %cst_22 : f32 to vector<8x1xf32>
    %47 = arith.divf %45, %46 : vector<8x1xf32>
    %48 = vector.broadcast %47 : vector<8x1xf32> to vector<8x16xf32>
    %49 = arith.subf %43, %48 : vector<8x16xf32>
    %50 = arith.mulf %49, %49 : vector<8x16xf32>
    %cst_23 = arith.constant dense<0.000000e+00> : vector<8xf32>
    %51 = vector.multi_reduction <add>, %50, %cst_23 [1] : vector<8x16xf32> to vector<8xf32>
    %52 = vector.shape_cast %51 : vector<8xf32> to vector<8x1xf32>
    %cst_24 = arith.constant 1.600000e+01 : f32
    %53 = vector.broadcast %cst_24 : f32 to vector<8x1xf32>
    %54 = arith.divf %52, %53 : vector<8x1xf32>
    %55 = vector.broadcast %47 : vector<8x1xf32> to vector<8x16xf32>
    %56 = arith.subf %43, %55 : vector<8x16xf32>
    %cst_25 = arith.constant 9.99999974E-6 : f32
    %57 = vector.broadcast %cst_25 : f32 to vector<8x1xf32>
    %58 = arith.addf %54, %57 : vector<8x1xf32>
    %59 = math.rsqrt %58 : vector<8x1xf32>
    %60 = vector.broadcast %59 : vector<8x1xf32> to vector<8x16xf32>
    %61 = arith.mulf %56, %60 : vector<8x16xf32>
    %62 = vector.broadcast %35 : vector<1x16xf32> to vector<8x16xf32>
    %63 = arith.mulf %61, %62 : vector<8x16xf32>
    %64 = vector.broadcast %36 : vector<1x16xf32> to vector<8x16xf32>
    %65 = arith.addf %63, %64 : vector<8x16xf32>
    %c0_26 = arith.constant 0 : index
    %c0_27 = arith.constant 0 : index
    %66 = vector.load %arg6[%c0_26, %c0_27] : memref<16x64xf32, #tpu.memory_space<vmem>>, vector<16x64xf32>
    %cst_28 = arith.constant dense<0.000000e+00> : vector<8x64xf32>
    %67 = tpu.matmul %65, %66, %cst_28 {dimension_numbers = #tpu.dot_dimension_numbers<[1], [0], [0], [1], [0, 0, 1, 1], [], []>} : vector<8x16xf32>, vector<16x64xf32>, vector<8x64xf32> -> vector<8x64xf32>
    %c0_29 = arith.constant 0 : index
    %c0_30 = arith.constant 0 : index
    %68 = vector.load %arg7[%c0_29, %c0_30] : memref<1x64xf32, #tpu.memory_space<vmem>>, vector<1x64xf32>
    %69 = vector.broadcast %68 : vector<1x64xf32> to vector<8x64xf32>
    %70 = arith.addf %67, %69 : vector<8x64xf32>
    %cst_31 = arith.constant 0.000000e+00 : f32
    %71 = vector.broadcast %cst_31 : f32 to vector<8x64xf32>
    %72 = arith.maximumf %70, %71 : vector<8x64xf32>
    %c0_32 = arith.constant 0 : index
    %c0_33 = arith.constant 0 : index
    %73 = vector.load %arg8[%c0_32, %c0_33] : memref<64x16xf32, #tpu.memory_space<vmem>>, vector<64x16xf32>
    %cst_34 = arith.constant dense<0.000000e+00> : vector<8x16xf32>
    %74 = tpu.matmul %72, %73, %cst_34 {dimension_numbers = #tpu.dot_dimension_numbers<[1], [0], [0], [1], [0, 0, 1, 1], [], []>} : vector<8x64xf32>, vector<64x16xf32>, vector<8x16xf32> -> vector<8x16xf32>
    %75 = vector.broadcast %34 : vector<1x16xf32> to vector<8x16xf32>
    %76 = arith.addf %74, %75 : vector<8x16xf32>
    %77 = arith.addf %5, %76 : vector<8x16xf32>
    %cst_35 = arith.constant dense<0.000000e+00> : vector<8xf32>
    %78 = vector.multi_reduction <add>, %77, %cst_35 [1] : vector<8x16xf32> to vector<8xf32>
    %79 = vector.shape_cast %78 : vector<8xf32> to vector<8x1xf32>
    %cst_36 = arith.constant 1.600000e+01 : f32
    %80 = vector.broadcast %cst_36 : f32 to vector<8x1xf32>
    %81 = arith.divf %79, %80 : vector<8x1xf32>
    %82 = vector.broadcast %81 : vector<8x1xf32> to vector<8x16xf32>
    %83 = arith.subf %77, %82 : vector<8x16xf32>
    %84 = arith.mulf %83, %83 : vector<8x16xf32>
    %cst_37 = arith.constant dense<0.000000e+00> : vector<8xf32>
    %85 = vector.multi_reduction <add>, %84, %cst_37 [1] : vector<8x16xf32> to vector<8xf32>
    %86 = vector.shape_cast %85 : vector<8xf32> to vector<8x1xf32>
    %cst_38 = arith.constant 1.600000e+01 : f32
    %87 = vector.broadcast %cst_38 : f32 to vector<8x1xf32>
    %88 = arith.divf %86, %87 : vector<8x1xf32>
    %89 = vector.broadcast %81 : vector<8x1xf32> to vector<8x16xf32>
    %90 = arith.subf %77, %89 : vector<8x16xf32>
    %cst_39 = arith.constant 9.99999974E-6 : f32
    %91 = vector.broadcast %cst_39 : f32 to vector<8x1xf32>
    %92 = arith.addf %88, %91 : vector<8x1xf32>
    %93 = math.rsqrt %92 : vector<8x1xf32>
    %94 = vector.broadcast %93 : vector<8x1xf32> to vector<8x16xf32>
    %95 = arith.mulf %90, %94 : vector<8x16xf32>
    %96 = vector.broadcast %37 : vector<1x16xf32> to vector<8x16xf32>
    %97 = arith.mulf %95, %96 : vector<8x16xf32>
    %98 = vector.broadcast %38 : vector<1x16xf32> to vector<8x16xf32>
    %99 = arith.addf %97, %98 : vector<8x16xf32>
    %100 = tpu.concatenate %65, %99 in 1 : vector<8x16xf32>, vector<8x16xf32> -> vector<8x32xf32>
    %c0_40 = arith.constant 0 : index
    %c0_41 = arith.constant 0 : index
    %c0_42 = arith.constant 0 : index
    %101 = vector.load %arg10[%c0_40, %c0_41, %c0_42] : memref<1x8x32xf32, #tpu.memory_space<vmem>>, vector<1x8x32xf32>
    %102 = vector.shape_cast %101 : vector<1x8x32xf32> to vector<8x32xf32>
    %103 = vector.shape_cast %100 : vector<8x32xf32> to vector<1x8x32xf32>
    tpu.vector_store %arg10[%c0_40, %c0_41, %c0_42], %103 {strides = array<i32>} : memref<1x8x32xf32, #tpu.memory_space<vmem>>, vector<1x8x32xf32>,
    return
  }
  func.func @transform_0(%arg0: i32) -> (i32, i32, i32) {
    %c0_i32 = arith.constant 0 : i32
    %c0_i32_0 = arith.constant 0 : i32
    %c0_i32_1 = arith.constant 0 : i32
    return %arg0, %c0_i32, %c0_i32_0 : i32, i32, i32
  }
  func.func @transform_1(%arg0: i32) -> (i32, i32, i32) {
    %c0_i32 = arith.constant 0 : i32
    %c0_i32_0 = arith.constant 0 : i32
    %c0_i32_1 = arith.constant 0 : i32
    return %arg0, %c0_i32, %c0_i32_0 : i32, i32, i32
  }
  func.func @transform_2(%arg0: i32) -> (i32, i32) {
    %c0_i32 = arith.constant 0 : i32
    %c0_i32_0 = arith.constant 0 : i32
    %c0_i32_1 = arith.constant 0 : i32
    return %c0_i32, %c0_i32_0 : i32, i32
  }
  func.func @transform_3(%arg0: i32) -> (i32, i32) {
    %c0_i32 = arith.constant 0 : i32
    %c0_i32_0 = arith.constant 0 : i32
    %c0_i32_1 = arith.constant 0 : i32
    return %c0_i32, %c0_i32_0 : i32, i32
  }
  func.func @transform_4(%arg0: i32) -> (i32, i32) {
    %c0_i32 = arith.constant 0 : i32
    %c0_i32_0 = arith.constant 0 : i32
    %c0_i32_1 = arith.constant 0 : i32
    return %c0_i32, %c0_i32_0 : i32, i32
  }
  func.func @transform_5(%arg0: i32) -> (i32, i32) {
    %c0_i32 = arith.constant 0 : i32
    %c0_i32_0 = arith.constant 0 : i32
    %c0_i32_1 = arith.constant 0 : i32
    return %c0_i32, %c0_i32_0 : i32, i32
  }
  func.func @transform_6(%arg0: i32) -> (i32, i32) {
    %c0_i32 = arith.constant 0 : i32
    %c0_i32_0 = arith.constant 0 : i32
    %c0_i32_1 = arith.constant 0 : i32
    return %c0_i32, %c0_i32_0 : i32, i32
  }
  func.func @transform_7(%arg0: i32) -> (i32, i32) {
    %c0_i32 = arith.constant 0 : i32
    %c0_i32_0 = arith.constant 0 : i32
    %c0_i32_1 = arith.constant 0 : i32
    return %c0_i32, %c0_i32_0 : i32, i32
  }
  func.func @transform_8(%arg0: i32) -> (i32, i32) {
    %c0_i32 = arith.constant 0 : i32
    %c0_i32_0 = arith.constant 0 : i32
    %c0_i32_1 = arith.constant 0 : i32
    return %c0_i32, %c0_i32_0 : i32, i32
  }
  func.func @transform_9(%arg0: i32) -> (i32, i32, i32) {
    %c0_i32 = arith.constant 0 : i32
    %c0_i32_0 = arith.constant 0 : i32
    %c0_i32_1 = arith.constant 0 : i32
    return %arg0, %c0_i32, %c0_i32_0 : i32, i32, i32
  }
}

</mosaic_0001>

<bundles_post_ra>
// kernel: tpu_custom_call.1
= control target key start
LH: loop header
LB: loop body
LE: loop exit
PB: predicated region body
PF: predicated region fallthrough
CT: control target
= control target key end

     0   :  { %14 = vsyncpa [#allocation3], 0  ;;  %s1677_s0 = inlined_call_operand.vmem [shape: f32[2,8,32], index: 0, kind: input, shape index: {}]   ;;  %s1678_s1 = inlined_call_operand.vmem [shape: f32[2,8,16], index: 1, kind: input, shape index: {}]   ;;  %s1679_s2 = inlined_call_operand.vmem [shape: f32[16,64], index: 2, kind: input, shape index: {}]   ;;  %s1680_s3 = inlined_call_operand.vmem [shape: f32[1,64], index: 3, kind: input, shape index: {}]   ;;  %s1681_s4 = inlined_call_operand.vmem [shape: f32[32,16], index: 4, kind: input, shape index: {}]   ;;  %s1682_s5 = inlined_call_operand.vmem [shape: f32[16,64], index: 5, kind: input, shape index: {}]   ;;  %s1683_s6 = inlined_call_operand.vmem [shape: f32[1,64], index: 6, kind: input, shape index: {}]   ;;  %s1684_s7 = inlined_call_operand.vmem [shape: f32[64,16], index: 7, kind: input, shape index: {}]   ;;  %s1685_s8 = inlined_call_operand.vmem [shape: f32[6,16], index: 8, kind: input, shape index: {}]   ;;  %s1686_s9 = inlined_call_operand.hbm [shape: f32[2,8,32], index: 9, kind: output, shape index: {}]  }
   0x1   :  { %16 = vsyncpa [#allocation3 + $0x1], 0  ;;  %s1438_s30 = smov 0   ;;  %s1440_s10 = smov 0  }
   0x2   :  { %s1442_s11 = smov 0   ;;  %s1444_s12 = smov 0  }
   0x3 LB: > { %s1459_s13 = sadd.s32 4294967295, %s1379_s12   ;;  %s1153_s14 = sadd.s32 4294967294, %s1379_s12   ;;  %s1379_s12 = sphi %s1444_s12, %s1692_s12   ;;  %s1375_s11 = sphi %s1442_s11, %s1691_s11   ;;  %s1371_s10 = sphi %s1440_s10, %s1690_s10   ;;  %s1367_s30 = sphi %s1438_s30, %s1689_s30  }
   0x4   : > { %s1463_s15 = sadd.s32 1, %s1379_s12   ;;  %s228_s16 = sadd.s32 1, %s1375_s11 }
   0x5   : > { %s225_s17 = ssub.s32 %s1379_s12, %s1463_s15  ;;  %p238_p0 = scmp.ne.s32.totalorder %s1375_s11, %s1371_s10 }
   0x6   : > { %p226_p1 = scmp.eq.s32.totalorder %s225_s17, 0  ;;  %p239_p2 = scmp.eq.s32.totalorder %s1459_s13, 1 }
   0x7   : > { %p244_p3 = scmp.ne.s32.totalorder %s1371_s10, %s1367_s30  ;;  %p245_p4 = scmp.eq.s32.totalorder %s1153_s14, 1 }
   0x8   : > { %s1474_s18 = scalar_select %p226_p1, %s1375_s11, %s228_s16  }
   0x9   : > { %p1476_p5 = por %p239_p2, %p238_p0  ;;  %p1480_p6 = por %p245_p4, %p244_p3 }
   0xa   : > { %p1156_p7 = scmp.ge.s32.totalorder %s1379_s12, 1  ;;  %p298_p8 = scmp.lt.s32.totalorder %s1379_s12, 3 }
   0xc   : > { %p299_p9 = pnand %p1156_p7, %p298_p8 }
   0xd   : > { %p337_p10 = scmp.lt.s32.totalorder (!%p299_p9), %s1459_s13, 1  ;;  %s1383_s17 = smov (!%p299_p9), 96  }
   0xe   : > { %302 = sbr.rel (%p299_p9) target bundleno = 2378 (0x94a), region = 56  ;;  %s1385_s22 = smov (!%p299_p9), 16  }
  0x13   : > { %v348_v0 = vld [vmem:[%s1679_s2 + $0x8] sm:$0xff]  ;;  %v1381_v1 = vmov 0.0   ;;  %v347_v2 = vld [vmem:[%s1679_s2] sm:$0xff]  ;;  %vm1382_vm0 = vmmov 0   ;;  %s1497_s25 = scalar_select %p337_p10, %s1459_s13, 1  ;;  %vm356_vm1 = vcmask 130048   ;;  %v430_v11 = vlaneseq }
  0x14   : > { %1206 = vmatprep.subr.mxu1 %v1381_v1  ;;  %1210 = vmatprep.mubr.msk.f32.mxu1 %vm1382_vm0, %v1381_v1  ;;  %v1160_v4 = vld [vmem:[%s1680_s3] ss:$0 sm:$0xff]  ;;  %vm437_vm2 = vcmask 261120   ;;  %vm518_vm3 = vcmask 1043456   ;;  %v1384_v14 = vmov 1.0   ;;  %vm514_vm5 = vcmask 31744  }
  0x15   : > { %1207 = vmatpush3.msra.mxu1 %v348_v0  ;;  %1228 = vmatprep.subr.mxu0 %v1381_v1  ;;  %s1158_s26 = sshll.u32 %s1497_s25, 3  ;;  %v1525_v12 = vshrl.u32 %v430_v11, 7  ;;  %v433_v13 = vand.u32 127, %v430_v11  ;;  %v750_v20 = vld [vmem:[%s1681_s4 + $0x18] sm:$0xff]  ;;  %v749_v21 = vld [vmem:[%s1681_s4 + $0x10] sm:$0xff]  ;;  %v748_v27 = vld [vmem:[%s1681_s4 + $0x8] sm:$0xff] }
  0x16   : > { %1208 = vmatprep.subr.mxu1 %v1381_v1  ;;  %1230 = vmatprep.mubr.msk.f32.mxu0 %vm1382_vm0, %v1381_v1  ;;  %s344_s29 = scalar_lea.vmem %s1678_s1, %s1158_s26  ;;  %v747_v28 = vld [vmem:[%s1681_s4] sm:$0xff]  ;;  %s340_s23 = scalar_lea.vmem %s1677_s0, %s1158_s26  ;;  %v854_v47 = vld [vmem:[%s1682_s5 + $0x8] sm:$0xff]  ;;  %v943_v60 = vld [vmem:[%s1684_s7 + $0x38] sm:$0xff]  ;;  %vm948_vm6 = vcmask 523264  }
  0x17   : > { %1209 = vmatpush3.msra.mxu1 %v347_v2  ;;  %v346_v3 = vld [vmem:[%s344_s29] sm:$0xff]  ;;  %vm434_vm4 = vcmp.eq.s32.totalorder %v1525_v12, %v433_v13  ;;  %v753_v33 = vsub.s32 0, %v1525_v12  ;;  %v845_v52 = vsub.s32 2, %v1525_v12  ;;  %v850_v53 = vsub.s32 3, %v1525_v12  ;;  %v942_v61 = vld [vmem:[%s1684_s7 + $0x30] sm:$0xff]  ;;  %v941_v62 = vld [vmem:[%s1684_s7 + $0x28] sm:$0xff] }
  0x18   : > { %1213 = vmatprep.subr.mxu1 %v1381_v1  ;;  %1211 = vmatmul.mubr.msk.f32.vlgmr.msra.gmra.mxu1 %vm356_vm1, %v346_v3  ;;  %v435_v15 = vsel %vm434_vm4, 1e-05, %v1384_v14  ;;  %v1560_v34 = vld [vmem:[%s1685_s8] sm:$0x3f]  ;;  %v939_v0 = vld [vmem:[%s1684_s7 + $0x18] sm:$0xff]  ;;  %v938_v2 = vld [vmem:[%s1684_s7 + $0x10] sm:$0xff] }
  0x19   : > { %1215 = vmatprep.mubr.msk.f32.mxu1 %vm1382_vm0, %v1381_v1  ;;  %v436_v16 = vmul.f32 0.35355338, %v435_v15  ;;  %v754_v35 = vrot.slane %v1560_v34, %v753_v33  ;;  %v1568_v37 = vld [vmem:[%s340_s23] sm:$0xff]  ;;  %v846_v54 = vrot.slane %v1560_v34, %v845_v52  ;;  %v851_v57 = vrot.slane %v1560_v34, %v850_v53  ;;  %v937_v3 = vld [vmem:[%s1684_s7 + $0x8] sm:$0xff]  ;;  %s1386_s23 = smov 112   ;;  %s334_s25 = sand.u32 1, %s1371_s10  }
  0x1a   : > { %v853_v48 = vld [vmem:[%s1682_s5] sm:$0xff]  ;;  %s1157_s24 = sshll.u32 %s334_s25, 3  ;;  %s1175_s26 = sshll.u32 %s1459_s13, 7 }
  0x1b   : > { %v940_v63 = vld [vmem:[%s1684_s7 + $0x20] sm:$0xff]  ;;  %s336_s27 = scalar_lea.vmem [#allocation2], %s1157_s24  ;;  %s1639_s16 = scalar_lea.hbm %s1686_s9, %s1175_s26 }
  0x1c   : > { %s1082_s28 = sshll.u32 %s336_s27, 4  ;;  %s1387_s13 = smov [#allocation2]   ;;  %s1083_s28 = int_to_ptr.vmem [resolvable:$true] %s1082_s28 }
  0x1d   : > { %s1319_s21 = scalar_lea.vmem %s1083_s28, 128 }
  0x1e   : > { %p1320_p11 = scmp.ne.s32.totalorder %s1083_s28, %s1319_s21 }
  0x20   : > { %p1321_p12 = pnand %p1320_p11, %p1476_p5 }
  0x22   : > { %p1322_p13 = pneg %p1321_p12 }
  0xd8   : > { %v426_v5 = vpop.f32.mrf.mxu1 }
  0xd9   : > { %v427_v6 = vadd.f32 %v1160_v4, %v426_v5  ;;  %v936_v4 = vld [vmem:[%s1684_s7] sm:$0xff] }
  0xda   : > { %v1212_v7 = vpop.f32.mrf.mxu1  ;;  %v1171_v5 = vld [vmem:[%s1683_s6] ss:$0 sm:$0xff] }
  0xdb   : > { %512 = vrot.lane.b32.xlu0 %v427_v6, %s1383_s17  ;;  %1214 = vmatpush3.xpose.msk.msra.mxu1 %vm437_vm2, %v427_v6  ;;  %v591_v8 = vrot.slane %v427_v6, 4 }
  0xdc   : > { %1218 = vmatprep.subr.mxu1 %v1381_v1 }
  0xde   : > { %1216 = vmatmul.mubr.msk.f32.vlgmr.msra.gmra.mxu1 %vm437_vm2, %v427_v6 }
  0xdf   : > { %665 = vrot.lane.b32.xlu0 %v591_v8, %s1383_s17  ;;  %1220 = vmatprep.mubr.msk.f32.mxu1 %vm1382_vm0, %v1381_v1  ;;  %s1069_s17 = scalar_lea.sflag [#allocation3], %s334_s25 }
 0x14d   : > { %v513_v9 = vpop.permute.xlu0 %512 }
 0x14e   : > { %1219 = vmatpush3.msk.msra.mxu1 %vm518_vm3, %v513_v9 }
 0x14f   : > { %1223 = vmatprep.subr.mxu1 %v1381_v1 }
 0x151   : > { %v666_v10 = vpop.permute.xlu0 %665 }
 0x152   : > { %1229 = vmatpush3.msk.msra.mxu0 %vm518_vm3, %v666_v10  ;;  %v946_v10 = vsub.s32 1, %v1525_v12 }
 0x153   : > { %1244 = vmatprep.subr.mxu0 %v1381_v1 }
 0x154   : > { %v947_v11 = vrot.slane %v1560_v34, %v946_v10 }
 0x19e   : > { %v507_v17 = vpop.f32.mrf.mxu1 }
 0x19f   : > { %v511_v18 = vmul.f32 %v507_v17, %v436_v16 }
 0x1a0   : > { %v1217_v19 = vpop.f32.mrf.mxu1 }
 0x1a1   : > { %1221 = vmatmul.mubr.msk.f32.vlgmr.msra.gmra.mxu1 %vm514_vm5, %v511_v18  ;;  %v1050_v19 = vsub.s32 4, %v1525_v12 }
 0x1a2   : > { %1224 = vmatpush3.xpose.msk.msra.mxu1 %vm437_vm2, %v591_v8  ;;  %1225 = vmatprep.mubr.msk.f32.mxu1 %vm1382_vm0, %v1381_v1 }
 0x1a3   : > { %1233 = vmatprep.subr.mxu1 %v1381_v1 }
 0x1a5   : > { %1226 = vmatmul.mubr.msk.f32.vlgmr.msra.gmra.mxu1 %vm437_vm2, %v591_v8 }
 0x1a6   : > { %1241 = vmatprep.mubr.msk.f32.mxu1 %vm1382_vm0, %v1381_v1  ;;  %1234 = vmatpush3.msra.mxu1 %v750_v20  ;;  %v1059_v20 = vsub.s32 5, %v1525_v12 }
 0x1a7   : > { %1235 = vmatprep.subr.mxu1 %v1381_v1 }
 0x1a8   : > { %1236 = vmatpush3.msra.mxu1 %v749_v21  ;;  %v1051_v21 = vrot.slane %v1560_v34, %v1050_v19 }
 0x1a9   : > { %1237 = vmatprep.subr.mxu1 %v1381_v1 }
 0x1aa   : > { %1238 = vmatpush3.msra.mxu1 %v748_v27 }
 0x1ab   : > { %1239 = vmatprep.subr.mxu1 %v1381_v1 }
 0x1ac   : > { %1240 = vmatpush3.msra.mxu1 %v747_v28 }
 0x261   : > { %v587_v22 = vpop.f32.mrf.mxu1 }
 0x263   : > { %v1222_v23 = vpop.f32.mrf.mxu1 }
 0x265   : > { %v660_v24 = vpop.f32.mrf.mxu1 }
 0x266   : > { %v664_v25 = vmul.f32 %v660_v24, %v436_v16 }
 0x267   : > { %v1227_v26 = vpop.f32.mrf.mxu1 }
 0x268   : > { %1231 = vmatmul.mubr.msk.f32.vlgmr.msra.gmra.mxu0 %vm514_vm5, %v664_v25 }
 0x269   : > { %1248 = vmatprep.mubr.msk.f32.mxu0 %vm1382_vm0, %v1381_v1  ;;  %1245 = vmatpush3.msra.mxu0 %v854_v47 }
 0x26a   : > { %1246 = vmatprep.subr.mxu0 %v1381_v1 }
 0x26b   : > { %1247 = vmatpush3.msra.mxu0 %v853_v48 }
 0x26c   : > { %1251 = vmatprep.subr.mxu0 %v1381_v1 }
 0x328   : > { %v738_v29 = vpop.f32.mrf.mxu0 }
 0x329   : > { %v743_v30 = vrot.slane %v738_v29, 4 }
 0x32a   : > { %v1232_v31 = vpop.f32.mrf.mxu0 }
 0x32b   : > { %v745_v32 = vsel %vm518_vm3, %v587_v22, %v743_v30  ;;  %v1060_v22 = vrot.slane %v1560_v34, %v1059_v20 }
 0x32c   : > { %1242 = vmatmul.mubr.msk.f32.vlgmr.msra.gmra.mxu1 %vm437_vm2, %v745_v32 }
 0x3ec   : > { %v824_v36 = vpop.f32.mrf.mxu1 }
 0x3ed   : > { %v825_v38 = vadd.f32 %v824_v36, %v754_v35 }
 0x3ee   : > { %v1243_v39 = vpop.f32.mrf.mxu1 }
 0x3ef   : > { %v828_v40 = vadd.f32 %v825_v38, %v1568_v37 }
 0x3f1   : > { %v829_v41 = vsel %vm356_vm1, %v828_v40, 0.0 }
 0x3f2   : > { %830 = vadd.xlane.f32.xlu1 %v829_v41 }
 0x47b   : > { %v831_v42 = vpop.xlane.xlu1 %830 }
 0x47c   : > { %v833_v43 = vmul.f32 0.0625, %v831_v42 }
 0x47e   : > { %v834_v44 = vsub.f32 %v828_v40, %v833_v43 }
 0x480   : > { %v835_v45 = vmul.f32 %v834_v44, %v834_v44 }
 0x482   : > { %v836_v46 = vsel %vm356_vm1, %v835_v45, 0.0 }
 0x483   : > { %837 = vadd.xlane.f32.xlu1 %v836_v46 }
 0x50c   : > { %v838_v49 = vpop.xlane.xlu1 %837 }
 0x50d   : > { %v839_v50 = vmul.f32 0.0625, %v838_v49 }
 0x50f   : > { %v840_v51 = vadd.f32 1e-05, %v839_v50 }
 0x511   : > { %1315 = vrsqrt.f32 %v840_v51 }
 0x51e   : > { %v1316_v55 = vpop.eup %1315 }
 0x51f   : > { %v842_v56 = vmul.f32 %v1316_v55, %v834_v44 }
 0x521   : > { %v847_v58 = vmul.f32 %v846_v54, %v842_v56 }
 0x523   : > { %v1585_v59 = vadd.f32 %v851_v57, %v847_v58 }
 0x525   : > { %1249 = vmatmul.mubr.msk.f32.vlgmr.msra.gmra.mxu0 %vm356_vm1, %v1585_v59 }
 0x526   : > { %1252 = vmatpush3.msra.mxu0 %v943_v60  ;;  %1267 = vmatprep.mubr.msk.f32.mxu0 %vm1382_vm0, %v1381_v1 }
 0x527   : > { %1253 = vmatprep.subr.mxu0 %v1381_v1 }
 0x528   : > { %1254 = vmatpush3.msra.mxu0 %v942_v61 }
 0x529   : > { %1255 = vmatprep.subr.mxu0 %v1381_v1 }
 0x52a   : > { %1256 = vmatpush3.msra.mxu0 %v941_v62 }
 0x52b   : > { %1257 = vmatprep.subr.mxu0 %v1381_v1 }
 0x52c   : > { %1258 = vmatpush3.msra.mxu0 %v940_v63 }
 0x52d   : > { %1259 = vmatprep.subr.mxu0 %v1381_v1 }
 0x52e   : > { %1260 = vmatpush3.msra.mxu0 %v939_v0 }
 0x52f   : > { %1261 = vmatprep.subr.mxu0 %v1381_v1 }
 0x530   : > { %1262 = vmatpush3.msra.mxu0 %v938_v2 }
 0x531   : > { %1263 = vmatprep.subr.mxu0 %v1381_v1 }
 0x532   : > { %1264 = vmatpush3.msra.mxu0 %v937_v3 }
 0x533   : > { %1265 = vmatprep.subr.mxu0 %v1381_v1 }
 0x534   : > { %1266 = vmatpush3.msra.mxu0 %v936_v4 }
 0x5e5   : > { %v931_v6 = vpop.f32.mrf.mxu0 }
 0x5e6   : > { %v932_v7 = vadd.f32 %v1171_v5, %v931_v6 }
 0x5e7   : > { %v1250_v8 = vpop.f32.mrf.mxu0 }
 0x5e8   : > { %v935_v9 = vmax.f32 %v932_v7, 0.0 }
 0x5ea   : > { %1268 = vmatmul.mubr.msk.f32.vlgmr.msra.gmra.mxu0 %vm948_vm6, %v935_v9 }
 0x6aa   : > { %v1018_v13 = vpop.f32.mrf.mxu0 }
 0x6ab   : > { %v1019_v14 = vadd.f32 %v1018_v13, %v947_v11 }
 0x6ac   : > { %v1269_v15 = vpop.f32.mrf.mxu0 }
 0x6ad   : > { %1023 = vrot.lane.b32.xlu0 %v1019_v14, %s1385_s22 }
 0x71f   : > { %v1024_v1 = vpop.permute.xlu0 %1023 }
 0x720   : > { %v1026_v16 = vadd.f32 %v1024_v1, %v1568_v37 }
 0x722   : > { %1028 = vrot.lane.b32.xlu1 %v1026_v16, %s1386_s23 }
 0x794   : > { %v1029_v17 = vpop.permute.xlu1 %1028 }
 0x795   : > { %v1031_v18 = vsel %vm356_vm1, %v1029_v17, 0.0 }
 0x796   : > { %1032 = vadd.xlane.f32.xlu0 %v1031_v18 }
 0x7ac   : > { %1053 = vrot.lane.b32.xlu0 %v1051_v21, %s1385_s22 }
 0x7b0   : > { %1062 = vrot.lane.b32.xlu0 %v1060_v22, %s1385_s22  ;;  %s1323_s22 = sshll.u32 %s1387_s13, 4  ;;  %s1324_s22 = int_to_ptr.vmem [resolvable:$false] %s1323_s22 }
 0x7b1   : > { %p1326_p0 = scmp.lt.s32.totalorder %s1083_s28, %s1324_s22 }
 0x81f   : > { %v1033_v23 = vpop.xlane.xlu0 %1032 }
 0x820   : > { %v1034_v24 = vmul.f32 0.0625, %v1033_v23 }
 0x822   : > { %v1035_v25 = vsub.f32 %v1026_v16, %v1034_v24 }
 0x823   : > { %v1054_v31 = vpop.permute.xlu0 %1053 }
 0x824   : > { %v1036_v26 = vmul.f32 %v1035_v25, %v1035_v25 }
 0x826   : > { %1038 = vrot.lane.b32.xlu1 %v1036_v26, %s1386_s23  ;;  %s1325_s23 = scalar_lea.vmem %s1324_s22, 256 }
 0x827   : > { %v1063_v34 = vpop.permute.xlu0 %1062  ;;  %p1327_p1 = scmp.lt.s32.totalorder %s1325_s23, %s1319_s21 }
 0x829   : > { %p1328_p2 = por %p1327_p1, %p1326_p0 }
 0x82b   : > { %p1329_p3 = pnand %p1328_p2, %p1322_p13 }
 0x898   : > { %v1039_v27 = vpop.permute.xlu1 %1038 }
 0x899   : > { %v1041_v28 = vsel %vm356_vm1, %v1039_v27, 0.0 }
 0x89a   : > { %1042 = vadd.xlane.f32.xlu1 %v1041_v28 }
 0x923   : > { %v1043_v29 = vpop.xlane.xlu1 %1042 }
 0x924   : > { %v1044_v30 = vmul.f32 0.0625, %v1043_v29 }
 0x926   : > { %v1045_v12 = vadd.f32 1e-05, %v1044_v30 }
 0x928   : > { %1317 = vrsqrt.f32 %v1045_v12 }
 0x935   : > { %v1318_v32 = vpop.eup %1317 }
 0x936   : > { %v1047_v33 = vmul.f32 %v1318_v32, %v1035_v25 }
 0x938   : > { %v1056_v35 = vmul.f32 %v1054_v31, %v1047_v33 }
 0x93a   : > { %v1065_v36 = vadd.f32 %v1063_v34, %v1056_v35 }
 0x93c   : > { %v1066_v37 = vsel %vm356_vm1, %v1585_v59, %v1065_v36 }
 0x93d   : > { %1067 = vst.msk [vmem:[%s336_s27] sm:$0xff] %vm437_vm2, %v1066_v37 }
 0x93e   : > { %1332 = shalt.err (!%p1329_p3)
}
 0x93f   : > { %s1333_s24 = scalar_lea.hbm %s1639_s16, 128  ;;  %s1337_s27 = scalar_lea.hbm %s1686_s9, 256 }
 0x940   : > { %p1334_p4 = scmp.ne.s32.totalorder %s1639_s16, %s1333_s24  ;;  %p1338_p9 = scmp.lt.s32.totalorder %s1639_s16, %s1686_s9 }
 0x941   : > { %p1339_p10 = scmp.lt.s32.totalorder %s1337_s27, %s1333_s24 }
 0x942   : > { %p1335_p7 = pnand %p1334_p4, %p1476_p5 }
 0x943   : > { %p1340_p11 = por %p1339_p10, %p1338_p9 }
 0x944   : > { %p1336_p8 = pneg %p1335_p7 }
 0x946   : > { %p1341_p12 = pnand %p1340_p11, %p1336_p8 }
 0x948   : > { %1344 = shalt.err (!%p1341_p12)
}
 0x949   : > { %1270 = dma.vmem_to_hbm [thread:$0]  (%p1476_p5), %s1083_s28, 128, %s1639_s16, %s1069_s17  }
 0x94a PF: > { %p1276_p13 = scmp.ge.s32.totalorder %s1379_s12, 2  ;;  %s1094_s21 = sand.u32 1, %s1367_s30  }
 0x94b   : > { %s1095_s13 = scalar_lea.sflag [#allocation3], %s1094_s21 }
 0x94c   : > { %p1273_p0 = pnand %p1276_p13, %p1480_p6 }
 0x94e   : > { %p1274_p1 = pneg %p1273_p0 }
 0x950   : > { %1362 = dma.done.wait (%p1274_p1), %s1095_s13, 128  }
 0x951   : > { %1364 = vsyncadd (%p1274_p1), %s1095_s13, 4294967168  ;;  %p19_p2 = scmp.ge.s32.totalorder %s1463_s15, 4   ;;  %s1689_s30 = smov %s1371_s10 }
 0x952   : > { %s1690_s10 = smov %s1375_s11  ;;  %s1691_s11 = smov %s1474_s18 }
 0x953   : > { %s1692_s12 = smov %s1463_s15  ;;  %21 = sbr.rel (!%p19_p2) target bundleno = 3 (0x3), region = 94 }
 0x958   :  { %1100 = vsyncpa [#allocation3], 1 }
 0x959   :  { %1102 = vsyncpa [#allocation3 + $0x1], 1 }

</bundles_post_ra>
